<compile_context>
chip_gen: v7x
topology: tpu7x:2x2x1
jax: 0.10.0
libtpu: 0.0.40
codegen_flags: <defaults>
</compile_context>

<pallas_src>
import functools

import jax
import jax.numpy as jnp
from jax.experimental import pallas as pl
from jax.experimental.pallas import tpu as pltpu


def _leaky_relu(x, slope=0.2):
    return jnp.where(x > 0, x, slope * x)


def _round_up(n, m):
    return ((n + m - 1) // m) * m


def _discriminator_kernel(x_ref, w1_ref, b1_ref, w2_ref, b2_ref, w3_ref, b3_ref,
                          o_ref):
    # x_ref: (TB, D)  w1: (D, H1)  w2: (H1, H2)  w3: (H2, OUT_PAD)  o: (TB, 1)
    x = x_ref[...]

    h1 = jnp.dot(x, w1_ref[...], preferred_element_type=jnp.float32) + b1_ref[...]
    h1 = _leaky_relu(h1)

    h2 = jnp.dot(h1, w2_ref[...], preferred_element_type=jnp.float32) + b2_ref[...]
    h2 = _leaky_relu(h2)

    out = jnp.dot(h2, w3_ref[...], preferred_element_type=jnp.float32) + b3_ref[...]
    # Only column 0 is the real logit (w3/b3 padded cols are zero) -> store just it.
    o_ref[...] = out[:, :1].astype(o_ref.dtype)


def discriminator_forward(x, params, *, batch_tile=256):
    """Run the Discriminator MLP forward pass with a Pallas TPU kernel.

    x:       (B, input_dim) float32
    params:  dict with w1 (D,H1), b1 (1,H1), w2 (H1,H2), b2 (1,H2),
             w3 (H2, OUT_PAD), b3 (1, OUT_PAD)   (OUT_PAD = 128, col 0 is real)
    returns: (B, 1) float32
    """
    B, D = x.shape
    H1 = params["w1"].shape[1]
    H2 = params["w2"].shape[1]
    OUT_PAD = params["w3"].shape[1]

    # Batch tile: multiple of 8 sublanes, no larger than needed.
    TB = min(batch_tile, _round_up(B, 8))
    # Keep >= 2 grid steps when the batch allows it so both v7x TCs get work.
    if B >= 16 and pl.cdiv(B, TB) < 2:
        TB = _round_up(pl.cdiv(B, 2), 8)

    grid = (pl.cdiv(B, TB),)

    # Advisory cost hint for XLA scheduling around this custom call.
    flops = 2 * B * (D * H1 + H1 * H2 + H2 * OUT_PAD)
    weight_bytes = 4 * (D * H1 + H1 + H1 * H2 + H2 + H2 * OUT_PAD + OUT_PAD)
    bytes_accessed = 4 * B * (D + 1) + weight_bytes
    cost = pl.CostEstimate(flops=flops, transcendentals=0,
                           bytes_accessed=bytes_accessed)

    out = pl.pallas_call(
        _discriminator_kernel,
        out_shape=jax.ShapeDtypeStruct((B, 1), jnp.float32),
        grid_spec=pltpu.PrefetchScalarGridSpec(
            num_scalar_prefetch=0,
            grid=grid,
            in_specs=[
                pl.BlockSpec((TB, D), lambda i: (i, 0)),        # x tile
                pl.BlockSpec((D, H1), lambda i: (0, 0)),        # w1 (resident)
                pl.BlockSpec((1, H1), lambda i: (0, 0)),        # b1
                pl.BlockSpec((H1, H2), lambda i: (0, 0)),       # w2
                pl.BlockSpec((1, H2), lambda i: (0, 0)),        # b2
                pl.BlockSpec((H2, OUT_PAD), lambda i: (0, 0)),  # w3 (lane-padded)
                pl.BlockSpec((1, OUT_PAD), lambda i: (0, 0)),   # b3 (lane-padded)
            ],
            out_specs=pl.BlockSpec((TB, 1), lambda i: (i, 0)),  # real logit only
        ),
        compiler_params=pltpu.CompilerParams(
            dimension_semantics=("parallel",)),
        cost_estimate=cost,
    )(x, params["w1"], params["b1"], params["w2"], params["b2"],
      params["w3"], params["b3"])

    return out  # (B, 1)


def init_discriminator_params(key, input_dim, hidden_dims=(256, 256),
                              out_pad=128):
    """Deterministic synthetic init mimicking nn.Linear shapes.

    PyTorch Linear weight is (out, in); we store the transpose (in, out).
    The final (H2, 1) layer is zero-padded to (H2, out_pad) for the MXU.
    """
    dims = [input_dim] + list(hidden_dims) + [1]
    keys = jax.random.split(key, 2 * (len(dims) - 1))
    params = {}
    for li in range(len(dims) - 1):
        d_in, d_out = dims[li], dims[li + 1]
        bound = 1.0 / jnp.sqrt(jnp.float32(d_in))  # PyTorch default bound
        w = jax.random.uniform(keys[2 * li], (d_in, d_out),
                               minval=-bound, maxval=bound, dtype=jnp.float32)
        b = jax.random.uniform(keys[2 * li + 1], (1, d_out),
                               minval=-bound, maxval=bound, dtype=jnp.float32)
        if li == len(dims) - 2:
            w = jnp.pad(w, ((0, 0), (0, out_pad - d_out)))
            b = jnp.pad(b, ((0, 0), (0, out_pad - d_out)))
        params[f"w{li + 1}"] = w
        params[f"b{li + 1}"] = b
    return params


def discriminator_reference(x, params):
    """Plain-JAX reference of the same forward pass (for verification)."""
    h = _leaky_relu(x @ params["w1"] + params["b1"])
    h = _leaky_relu(h @ params["w2"] + params["b2"])
    o = h @ params["w3"] + params["b3"]
    return o[:, :1]


if __name__ == "__main__":
    key = jax.random.PRNGKey(0)
    k_param, k_x1, k_x2 = jax.random.split(key, 3)

    input_dim = 32
    hidden_dims = (256, 256)
    params = init_discriminator_params(k_param, input_dim, hidden_dims)

    fwd = jax.jit(functools.partial(discriminator_forward, batch_tile=256))

    # Case 1: small batch (single grid step).
    x1 = jax.random.normal(k_x1, (8, input_dim), dtype=jnp.float32)
    y1 = fwd(x1, params)
    jax.block_until_ready(y1)
    r1 = discriminator_reference(x1, params)
    assert y1.shape == (8, 1), y1.shape
    assert jnp.allclose(y1, r1, atol=1e-4, rtol=1e-4), (
        f"max err {jnp.max(jnp.abs(y1 - r1))}")

    # Case 2: ragged batch (2 grid steps, last block partial) — exercises the
    # no-pad path where OOB rows are masked by Pallas.
    x2 = jax.random.normal(k_x2, (20, input_dim), dtype=jnp.float32)
    y2 = fwd(x2, params)
    jax.block_until_ready(y2)
    r2 = discriminator_reference(x2, params)
    assert y2.shape == (20, 1), y2.shape
    assert jnp.allclose(y2, r2, atol=1e-4, rtol=1e-4), (
        f"max err {jnp.max(jnp.abs(y2 - r2))}")

    print("KERNEL_OK")
</pallas_src>

<mosaic_0001>
module attributes {stable_mosaic.version = 11 : i64} {
  func.func @_discriminator_kernel(%arg0: i32, %arg1: memref<8x32xf32, #tpu.memory_space<vmem>>, %arg2: memref<32x256xf32, #tpu.memory_space<vmem>>, %arg3: memref<1x256xf32, #tpu.memory_space<vmem>>, %arg4: memref<256x256xf32, #tpu.memory_space<vmem>>, %arg5: memref<1x256xf32, #tpu.memory_space<vmem>>, %arg6: memref<256x128xf32, #tpu.memory_space<vmem>>, %arg7: memref<1x128xf32, #tpu.memory_space<vmem>>, %arg8: memref<8x1xf32, #tpu.memory_space<vmem>>) attributes {dimension_semantics = [#tpu.dimension_semantics<parallel>], iteration_bounds = array<i64: 1>, scalar_prefetch = 0 : i64, scratch_operands = 0 : i64, tpu.core_type = #tpu.core_type<tc>, window_params = [{transform_indices = @transform_0, window_bounds = array<i64: 8, 32>}, {pipeline_mode = #tpu.pipeline_mode<synchronous>, transform_indices = @transform_1, window_bounds = array<i64: 32, 256>}, {pipeline_mode = #tpu.pipeline_mode<synchronous>, transform_indices = @transform_2, window_bounds = array<i64: 1, 256>}, {pipeline_mode = #tpu.pipeline_mode<synchronous>, transform_indices = @transform_3, window_bounds = array<i64: 256, 256>}, {pipeline_mode = #tpu.pipeline_mode<synchronous>, transform_indices = @transform_4, window_bounds = array<i64: 1, 256>}, {pipeline_mode = #tpu.pipeline_mode<synchronous>, transform_indices = @transform_5, window_bounds = array<i64: 256, 128>}, {pipeline_mode = #tpu.pipeline_mode<synchronous>, transform_indices = @transform_6, window_bounds = array<i64: 1, 128>}, {transform_indices = @transform_7, window_bounds = array<i64: 8, 1>}]} {
    %c0 = arith.constant 0 : index
    %c0_0 = arith.constant 0 : index
    %0 = vector.load %arg1[%c0, %c0_0] : memref<8x32xf32, #tpu.memory_space<vmem>>, vector<8x32xf32>
    %c0_1 = arith.constant 0 : index
    %c0_2 = arith.constant 0 : index
    %1 = vector.load %arg2[%c0_1, %c0_2] : memref<32x256xf32, #tpu.memory_space<vmem>>, vector<32x256xf32>
    %cst = arith.constant dense<0.000000e+00> : vector<8x256xf32>
    %2 = tpu.matmul %0, %1, %cst {dimension_numbers = #tpu.dot_dimension_numbers<[1], [0], [0], [1], [0, 0, 1, 1], [], []>} : vector<8x32xf32>, vector<32x256xf32>, vector<8x256xf32> -> vector<8x256xf32>
    %c0_3 = arith.constant 0 : index
    %c0_4 = arith.constant 0 : index
    %3 = vector.load %arg3[%c0_3, %c0_4] : memref<1x256xf32, #tpu.memory_space<vmem>>, vector<1x256xf32>
    %4 = vector.broadcast %3 : vector<1x256xf32> to vector<8x256xf32>
    %5 = arith.addf %2, %4 : vector<8x256xf32>
    %cst_5 = arith.constant 0.000000e+00 : f32
    %6 = vector.broadcast %cst_5 : f32 to vector<8x256xf32>
    %7 = arith.cmpf ogt, %5, %6 : vector<8x256xf32>
    %cst_6 = arith.constant 2.000000e-01 : f32
    %8 = vector.broadcast %cst_6 : f32 to vector<8x256xf32>
    %9 = arith.mulf %8, %5 : vector<8x256xf32>
    %10 = arith.select %7, %5, %9 : vector<8x256xi1>, vector<8x256xf32>
    %c0_7 = arith.constant 0 : index
    %c0_8 = arith.constant 0 : index
    %11 = vector.load %arg4[%c0_7, %c0_8] : memref<256x256xf32, #tpu.memory_space<vmem>>, vector<256x256xf32>
    %cst_9 = arith.constant dense<0.000000e+00> : vector<8x256xf32>
    %12 = tpu.matmul %10, %11, %cst_9 {dimension_numbers = #tpu.dot_dimension_numbers<[1], [0], [0], [1], [0, 0, 1, 1], [], []>} : vector<8x256xf32>, vector<256x256xf32>, vector<8x256xf32> -> vector<8x256xf32>
    %c0_10 = arith.constant 0 : index
    %c0_11 = arith.constant 0 : index
    %13 = vector.load %arg5[%c0_10, %c0_11] : memref<1x256xf32, #tpu.memory_space<vmem>>, vector<1x256xf32>
    %14 = vector.broadcast %13 : vector<1x256xf32> to vector<8x256xf32>
    %15 = arith.addf %12, %14 : vector<8x256xf32>
    %cst_12 = arith.constant 0.000000e+00 : f32
    %16 = vector.broadcast %cst_12 : f32 to vector<8x256xf32>
    %17 = arith.cmpf ogt, %15, %16 : vector<8x256xf32>
    %cst_13 = arith.constant 2.000000e-01 : f32
    %18 = vector.broadcast %cst_13 : f32 to vector<8x256xf32>
    %19 = arith.mulf %18, %15 : vector<8x256xf32>
    %20 = arith.select %17, %15, %19 : vector<8x256xi1>, vector<8x256xf32>
    %c0_14 = arith.constant 0 : index
    %c0_15 = arith.constant 0 : index
    %21 = vector.load %arg6[%c0_14, %c0_15] : memref<256x128xf32, #tpu.memory_space<vmem>>, vector<256x128xf32>
    %cst_16 = arith.constant dense<0.000000e+00> : vector<8x128xf32>
    %22 = tpu.matmul %20, %21, %cst_16 {dimension_numbers = #tpu.dot_dimension_numbers<[1], [0], [0], [1], [0, 0, 1, 1], [], []>} : vector<8x256xf32>, vector<256x128xf32>, vector<8x128xf32> -> vector<8x128xf32>
    %c0_17 = arith.constant 0 : index
    %c0_18 = arith.constant 0 : index
    %23 = vector.load %arg7[%c0_17, %c0_18] : memref<1x128xf32, #tpu.memory_space<vmem>>, vector<1x128xf32>
    %24 = vector.broadcast %23 : vector<1x128xf32> to vector<8x128xf32>
    %25 = arith.addf %22, %24 : vector<8x128xf32>
    %26 = vector.extract_strided_slice %25 {offsets = [0, 0], sizes = [8, 1], strides = [1, 1]} : vector<8x128xf32> to vector<8x1xf32>
    %c0_19 = arith.constant 0 : index
    %c0_20 = arith.constant 0 : index
    %27 = vector.load %arg8[%c0_19, %c0_20] : memref<8x1xf32, #tpu.memory_space<vmem>>, vector<8x1xf32>
    tpu.vector_store %arg8[%c0_19, %c0_20], %26 {strides = array<i32>} : memref<8x1xf32, #tpu.memory_space<vmem>>, vector<8x1xf32>,
    return
  }
  func.func @transform_0(%arg0: i32) -> (i32, i32) {
    %c0_i32 = arith.constant 0 : i32
    %c0_i32_0 = arith.constant 0 : i32
    return %arg0, %c0_i32 : i32, i32
  }
  func.func @transform_1(%arg0: i32) -> (i32, i32) {
    %c0_i32 = arith.constant 0 : i32
    %c0_i32_0 = arith.constant 0 : i32
    %c0_i32_1 = arith.constant 0 : i32
    return %c0_i32, %c0_i32_0 : i32, i32
  }
  func.func @transform_2(%arg0: i32) -> (i32, i32) {
    %c0_i32 = arith.constant 0 : i32
    %c0_i32_0 = arith.constant 0 : i32
    %c0_i32_1 = arith.constant 0 : i32
    return %c0_i32, %c0_i32_0 : i32, i32
  }
  func.func @transform_3(%arg0: i32) -> (i32, i32) {
    %c0_i32 = arith.constant 0 : i32
    %c0_i32_0 = arith.constant 0 : i32
    %c0_i32_1 = arith.constant 0 : i32
    return %c0_i32, %c0_i32_0 : i32, i32
  }
  func.func @transform_4(%arg0: i32) -> (i32, i32) {
    %c0_i32 = arith.constant 0 : i32
    %c0_i32_0 = arith.constant 0 : i32
    %c0_i32_1 = arith.constant 0 : i32
    return %c0_i32, %c0_i32_0 : i32, i32
  }
  func.func @transform_5(%arg0: i32) -> (i32, i32) {
    %c0_i32 = arith.constant 0 : i32
    %c0_i32_0 = arith.constant 0 : i32
    %c0_i32_1 = arith.constant 0 : i32
    return %c0_i32, %c0_i32_0 : i32, i32
  }
  func.func @transform_6(%arg0: i32) -> (i32, i32) {
    %c0_i32 = arith.constant 0 : i32
    %c0_i32_0 = arith.constant 0 : i32
    %c0_i32_1 = arith.constant 0 : i32
    return %c0_i32, %c0_i32_0 : i32, i32
  }
  func.func @transform_7(%arg0: i32) -> (i32, i32) {
    %c0_i32 = arith.constant 0 : i32
    %c0_i32_0 = arith.constant 0 : i32
    return %arg0, %c0_i32 : i32, i32
  }
}

</mosaic_0001>

<bundles_post_ra>
// kernel: discriminator_forward.1
= control target key start
LH: loop header
LB: loop body
LE: loop exit
PB: predicated region body
PF: predicated region fallthrough
CT: control target
= control target key end

     0   :  { %12 = vsyncpa [#allocation3], 0  ;;  %s811_s0 = inlined_call_operand.hbm [shape: f32[8,32], index: 0, kind: input, shape index: {}]   ;;  %s812_s1 = inlined_call_operand.hbm [shape: f32[32,256], index: 1, kind: input, shape index: {}]   ;;  %s813_s2 = inlined_call_operand.vmem [shape: f32[1,256], index: 2, kind: input, shape index: {}]   ;;  %s814_s3 = inlined_call_operand.hbm [shape: f32[256,256], index: 3, kind: input, shape index: {}]   ;;  %s815_s4 = inlined_call_operand.vmem [shape: f32[1,256], index: 4, kind: input, shape index: {}]   ;;  %s816_s5 = inlined_call_operand.hbm [shape: f32[256,128], index: 5, kind: input, shape index: {}]   ;;  %s817_s6 = inlined_call_operand.vmem [shape: f32[1,128], index: 6, kind: input, shape index: {}]   ;;  %s818_s7 = inlined_call_operand.vmem [shape: f32[8,1], index: 7, kind: output, shape index: {}]  }
   0x1   :  { %13 = vsyncpa [#allocation5], 0 }
   0x2   :  { %14 = vsyncpa [#allocation8], 0  ;;  %s696_s24 = smov [#allocation4]   ;;  %s602_s28 = scalar_lea.hbm %s812_s1, 1024 }
   0x3   :  { %s30_s25 = sshll.u32 %s696_s24, 4  ;;  %p603_p0 = scmp.ne.s32.totalorder %s812_s1, %s602_s28  ;;  %s31_s25 = int_to_ptr.vmem [resolvable:$true] %s30_s25 }
   0x4   :  { %p606_p1 = scmp.lt.u32.totalorder %s602_s28, %s812_s1 }
   0x6   :  { %p608_p2 = pnand %p606_p1, %p603_p0 }
   0x8   :  { %611 = shalt.err (!%p608_p2)
}
   0x9   :  { %s612_s10 = scalar_lea.vmem %s31_s25, 1024  ;;  %p617_p4 = scmp.lt.s32.totalorder %s31_s25, %s31_s25 }
   0xa   :  { %p613_p3 = scmp.ne.s32.totalorder %s31_s25, %s612_s10  ;;  %p618_p5 = scmp.lt.s32.totalorder %s612_s10, %s612_s10 }
   0xc   :  { %p619_p6 = por %p618_p5, %p617_p4 }
   0xe   :  { %p620_p7 = pnand %p619_p6, %p613_p3 }
  0x10   :  { %623 = shalt.err (!%p620_p7)
}
  0x11   :  { %s697_s11 = smov 256   ;;  %s698_s12 = smov 16  }
  0x12   :  { %36 = dma.hbm_to_vmem [thread:$0]  %s812_s1, 1024, %s31_s25, [#allocation5], %s697_s11, %s697_s11, %s698_s12  }
  0x13   :  { %s699_s15 = smov [#allocation2]   ;;  %s700_s17 = smov [#allocation6]  }
  0x14   :  { %s21_s16 = sshll.u32 %s699_s15, 4  ;;  %s44_s18 = sshll.u32 %s700_s17, 4  ;;  %s22_s16 = int_to_ptr.vmem [resolvable:$true] %s21_s16  ;;  %s45_s18 = int_to_ptr.vmem [resolvable:$true] %s44_s18 }
  0x15   :  { %s624_s21 = scalar_lea.hbm %s811_s0, 128 }
  0x16   :  { %p625_p8 = scmp.ne.s32.totalorder %s811_s0, %s624_s21  ;;  %p628_p9 = scmp.lt.u32.totalorder %s624_s21, %s811_s0 }
  0x18   :  { %p630_p10 = pnand %p628_p9, %p625_p8 }
  0x1a   :  { %633 = shalt.err (!%p630_p10)
}
  0x1b   :  { %s634_s1 = scalar_lea.vmem %s22_s16, 128  ;;  %p639_p12 = scmp.lt.s32.totalorder %s22_s16, %s22_s16 }
  0x1c   :  { %p635_p11 = scmp.ne.s32.totalorder %s22_s16, %s634_s1  ;;  %p640_p13 = scmp.lt.s32.totalorder %s634_s1, %s634_s1 }
  0x1e   :  { %p641_p0 = por %p640_p13, %p639_p12 }
  0x20   :  { %p642_p1 = pnand %p641_p0, %p635_p11 }
  0x22   :  { %645 = shalt.err (!%p642_p1)
}
  0x23   :  { %24 = dma.hbm_to_vmem [thread:$0]  %s811_s0, 128, %s22_s16, [#allocation3]  }
  0x24   :  { %s646_s30 = scalar_lea.hbm %s814_s3, 8192 }
  0x25   :  { %p647_p2 = scmp.ne.s32.totalorder %s814_s3, %s646_s30  ;;  %p650_p3 = scmp.lt.u32.totalorder %s646_s30, %s814_s3 }
  0x27   :  { %p652_p4 = pnand %p650_p3, %p647_p2 }
  0x29   :  { %655 = shalt.err (!%p652_p4)
}
  0x2a   :  { %s656_s14 = scalar_lea.vmem %s45_s18, 8192  ;;  %p661_p6 = scmp.lt.s32.totalorder %s45_s18, %s45_s18 }
  0x2b   :  { %p657_p5 = scmp.ne.s32.totalorder %s45_s18, %s656_s14  ;;  %p662_p7 = scmp.lt.s32.totalorder %s656_s14, %s656_s14 }
  0x2d   :  { %p663_p8 = por %p662_p7, %p661_p6 }
  0x2f   :  { %p664_p9 = pnand %p663_p8, %p657_p5 }
  0x31   :  { %667 = shalt.err (!%p664_p9)
}
  0x32   :  { %50 = dma.hbm_to_vmem [thread:$0]  %s814_s3, 8192, %s45_s18, [#allocation5], %s697_s11, %s697_s11, %s698_s12  }
  0x33   :  { %s701_s16 = smov [#allocation7]   ;;  %s668_s21 = scalar_lea.hbm %s816_s5, 4096 }
  0x34   :  { %s58_s17 = sshll.u32 %s701_s16, 4  ;;  %p669_p10 = scmp.ne.s32.totalorder %s816_s5, %s668_s21  ;;  %s59_s17 = int_to_ptr.vmem [resolvable:$true] %s58_s17 }
  0x35   :  { %p672_p11 = scmp.lt.u32.totalorder %s668_s21, %s816_s5 }
  0x37   :  { %p674_p12 = pnand %p672_p11, %p669_p10 }
  0x39   :  { %677 = shalt.err (!%p674_p12)
}
  0x3a   :  { %s678_s1 = scalar_lea.vmem %s59_s17, 4096  ;;  %p683_p0 = scmp.lt.s32.totalorder %s59_s17, %s59_s17 }
  0x3b   :  { %p679_p13 = scmp.ne.s32.totalorder %s59_s17, %s678_s1  ;;  %p684_p1 = scmp.lt.s32.totalorder %s678_s1, %s678_s1 }
  0x3d   :  { %p685_p2 = por %p684_p1, %p683_p0 }
  0x3f   :  { %p686_p3 = pnand %p685_p2, %p679_p13 }
  0x41   :  { %689 = shalt.err (!%p686_p3)
}
  0x42   :  { %s702_s3 = smov 128   ;;  %s703_s11 = smov 8  }
  0x43   :  { %64 = dma.hbm_to_vmem [thread:$0]  %s816_s5, 4096, %s59_s17, [#allocation8], %s702_s3, %s702_s3, %s703_s11  }
  0x44   :  { %690 = dma.done.wait [#allocation3], 128  }
  0x45   :  { %691 = vsyncadd [#allocation3], 4294967168 }
  0x46   :  { %692 = dma.done.wait [#allocation5], 9216  }
  0x47   :  { %693 = vsyncadd [#allocation5], 4294958080 }
  0x48   :  { %694 = dma.done.wait [#allocation8], 4096  }
  0x49   :  { %695 = vsyncadd [#allocation8], 4294963200  ;;  %v704_v0 = vmov 0.0   ;;  %v81_v1 = vld [vmem:[#allocation4 + $0x8] sm:$0xff]  ;;  %v83_v2 = vld [vmem:[#allocation4 + $0x18] sm:$0xff]  ;;  %vm100_vm0 = vcmask 261120  }
  0x4a   :  { %168 = vmatprep.mubr.f32.mxu0 %v704_v0  ;;  %v80_v3 = vld [vmem:[#allocation4] sm:$0xff]  ;;  %v489_v4 = vpack.c.bf16 %v83_v2, %v81_v1  ;;  %v82_v5 = vld [vmem:[#allocation4 + $0x10] sm:$0xff]  ;;  %v85_v6 = vld [vmem:[#allocation4 + $0x28] sm:$0xff]  ;;  %vm443_vm5 = vcmask 7168  }
  0x4b   :  { %v87_v7 = vld [vmem:[#allocation4 + $0x38] sm:$0xff]  ;;  %v491_v8 = vpack.c.bf16 %v82_v5, %v80_v3  ;;  %v84_v10 = vld [vmem:[#allocation4 + $0x20] sm:$0xff]  ;;  %v86_v11 = vld [vmem:[#allocation4 + $0x30] sm:$0xff] }
  0x4c   :  { %v493_v9 = vpack.c.bf16 %v87_v7, %v85_v6  ;;  %490 = vmatprep.subr.bf16.mxu0 %v489_v4  ;;  %v182_v12 = vld [vmem:[#allocation6 + $0x8] sm:$0xff]  ;;  %v184_v13 = vld [vmem:[#allocation6 + $0x18] sm:$0xff]  ;;  %v181_v14 = vld [vmem:[#allocation6] sm:$0xff]  ;;  %v495_v15 = vpack.c.bf16 %v86_v11, %v84_v10 }
  0x4d   :  { %492 = vmatpush1.bf16.msra.mxu0 %v491_v8  ;;  %v497_v16 = vpack.c.bf16 %v184_v13, %v182_v12  ;;  %v183_v17 = vld [vmem:[#allocation6 + $0x10] sm:$0xff]  ;;  %v186_v18 = vld [vmem:[#allocation6 + $0x28] sm:$0xff]  ;;  %v188_v19 = vld [vmem:[#allocation6 + $0x38] sm:$0xff] }
  0x4e   :  { %494 = vmatprep.subr.bf16.mxu0 %v493_v9  ;;  %v499_v20 = vpack.c.bf16 %v183_v17, %v181_v14  ;;  %v501_v21 = vpack.c.bf16 %v188_v19, %v186_v18  ;;  %v185_v22 = vld [vmem:[#allocation6 + $0x20] sm:$0xff]  ;;  %v187_v23 = vld [vmem:[#allocation6 + $0x30] sm:$0xff]  ;;  %v190_v24 = vld [vmem:[#allocation6 + $0x48] sm:$0xff] }
  0x4f   :  { %498 = vmatprep.subr.bf16.mxu1 %v497_v16  ;;  %v192_v25 = vld [vmem:[#allocation6 + $0x58] sm:$0xff]  ;;  %v503_v26 = vpack.c.bf16 %v187_v23, %v185_v22  ;;  %v189_v29 = vld [vmem:[#allocation6 + $0x40] sm:$0xff]  ;;  %v191_v30 = vld [vmem:[#allocation6 + $0x50] sm:$0xff] }
  0x50   :  { %500 = vmatpush1.bf16.msra.mxu1 %v499_v20  ;;  %v79_v27 = vld [vmem:[#allocation2] sm:$0xff]  ;;  %v505_v28 = vpack.c.bf16 %v192_v25, %v190_v24  ;;  %v194_v31 = vld [vmem:[#allocation6 + $0x68] sm:$0xff]  ;;  %v507_v33 = vpack.c.bf16 %v191_v30, %v189_v29  ;;  %v193_v35 = vld [vmem:[#allocation6 + $0x60] sm:$0xff] }
  0x51   :  { %496 = vmatpush1.bf16.msra.mxu0 %v495_v15  ;;  %502 = vmatprep.subr.bf16.mxu1 %v501_v21  ;;  %v196_v32 = vld [vmem:[#allocation6 + $0x78] sm:$0xff]  ;;  %v195_v36 = vld [vmem:[#allocation6 + $0x70] sm:$0xff]  ;;  %v198_v37 = vld [vmem:[#allocation6 + $0x88] sm:$0xff] }
  0x52   :  { %v509_v34 = vpack.c.bf16 %v196_v32, %v194_v31  ;;  %v200_v38 = vld [vmem:[#allocation6 + $0x98] sm:$0xff]  ;;  %v511_v39 = vpack.c.bf16 %v195_v36, %v193_v35  ;;  %v197_v41 = vld [vmem:[#allocation6 + $0x80] sm:$0xff]  ;;  %v199_v42 = vld [vmem:[#allocation6 + $0x90] sm:$0xff] }
  0x53   :  { %v513_v40 = vpack.c.bf16 %v200_v38, %v198_v37  ;;  %v202_v43 = vld [vmem:[#allocation6 + $0xa8] sm:$0xff]  ;;  %v204_v44 = vld [vmem:[#allocation6 + $0xb8] sm:$0xff]  ;;  %v515_v45 = vpack.c.bf16 %v199_v42, %v197_v41  ;;  %v201_v47 = vld [vmem:[#allocation6 + $0xa0] sm:$0xff] }
  0x54   :  { %452 = vmatmul.mubr.msk.f32.vlgmr.msra.gmra.mrb[0].mxu0 %vm100_vm0, %v79_v27  ;;  %504 = vmatpush1.bf16.msra.mxu1 %v503_v26  ;;  %v517_v46 = vpack.c.bf16 %v204_v44, %v202_v43  ;;  %v203_v48 = vld [vmem:[#allocation6 + $0xb0] sm:$0xff]  ;;  %v206_v49 = vld [vmem:[#allocation6 + $0xc8] sm:$0xff]  ;;  %v208_v50 = vld [vmem:[#allocation6 + $0xd8] sm:$0xff] }
  0x55   :  { %506 = vmatprep.subr.bf16.mxu1 %v505_v28  ;;  %v519_v51 = vpack.c.bf16 %v203_v48, %v201_v47  ;;  %v521_v52 = vpack.c.bf16 %v208_v50, %v206_v49  ;;  %v205_v53 = vld [vmem:[#allocation6 + $0xc0] sm:$0xff]  ;;  %v207_v54 = vld [vmem:[#allocation6 + $0xd0] sm:$0xff]  ;;  %v210_v55 = vld [vmem:[#allocation6 + $0xe8] sm:$0xff] }
  0x56   :  { %v212_v56 = vld [vmem:[#allocation6 + $0xf8] sm:$0xff]  ;;  %v523_v57 = vpack.c.bf16 %v207_v54, %v205_v53  ;;  %v209_v59 = vld [vmem:[#allocation6 + $0xe0] sm:$0xff]  ;;  %v211_v60 = vld [vmem:[#allocation6 + $0xf0] sm:$0xff] }
  0x57   :  { %v525_v58 = vpack.c.bf16 %v212_v56, %v210_v55  ;;  %v214_v61 = vld [vmem:[#allocation6 + $0x108] sm:$0xff]  ;;  %v216_v62 = vld [vmem:[#allocation6 + $0x118] sm:$0xff]  ;;  %v527_v63 = vpack.c.bf16 %v211_v60, %v209_v59  ;;  %v213_v1 = vld [vmem:[#allocation6 + $0x100] sm:$0xff] }
  0x58   :  { %508 = vmatpush1.bf16.msra.mxu1 %v507_v33  ;;  %v529_v0 = vpack.c.bf16 %v216_v62, %v214_v61  ;;  %v215_v2 = vld [vmem:[#allocation6 + $0x110] sm:$0xff]  ;;  %v218_v3 = vld [vmem:[#allocation6 + $0x128] sm:$0xff]  ;;  %v220_v4 = vld [vmem:[#allocation6 + $0x138] sm:$0xff] }
  0x59   :  { %510 = vmatprep.subr.bf16.mxu1 %v509_v34  ;;  %v531_v5 = vpack.c.bf16 %v215_v2, %v213_v1  ;;  %v533_v6 = vpack.c.bf16 %v220_v4, %v218_v3  ;;  %v217_v7 = vld [vmem:[#allocation6 + $0x120] sm:$0xff]  ;;  %v219_v8 = vld [vmem:[#allocation6 + $0x130] sm:$0xff]  ;;  %v222_v9 = vld [vmem:[#allocation6 + $0x148] sm:$0xff] }
  0x5a   :  { %v224_v10 = vld [vmem:[#allocation6 + $0x158] sm:$0xff]  ;;  %v535_v11 = vpack.c.bf16 %v219_v8, %v217_v7  ;;  %v221_v13 = vld [vmem:[#allocation6 + $0x140] sm:$0xff]  ;;  %v223_v14 = vld [vmem:[#allocation6 + $0x150] sm:$0xff] }
  0x5b   :  { %v537_v12 = vpack.c.bf16 %v224_v10, %v222_v9  ;;  %v226_v15 = vld [vmem:[#allocation6 + $0x168] sm:$0xff]  ;;  %v228_v16 = vld [vmem:[#allocation6 + $0x178] sm:$0xff]  ;;  %v539_v17 = vpack.c.bf16 %v223_v14, %v221_v13  ;;  %v225_v19 = vld [vmem:[#allocation6 + $0x160] sm:$0xff] }
  0x5c   :  { %512 = vmatpush1.bf16.msra.mxu1 %v511_v39  ;;  %v541_v18 = vpack.c.bf16 %v228_v16, %v226_v15  ;;  %v227_v20 = vld [vmem:[#allocation6 + $0x170] sm:$0xff]  ;;  %v230_v21 = vld [vmem:[#allocation6 + $0x188] sm:$0xff]  ;;  %v232_v22 = vld [vmem:[#allocation6 + $0x198] sm:$0xff] }
  0x5d   :  { %514 = vmatprep.subr.bf16.mxu1 %v513_v40  ;;  %v543_v23 = vpack.c.bf16 %v227_v20, %v225_v19  ;;  %v545_v24 = vpack.c.bf16 %v232_v22, %v230_v21  ;;  %v229_v25 = vld [vmem:[#allocation6 + $0x180] sm:$0xff]  ;;  %v231_v26 = vld [vmem:[#allocation6 + $0x190] sm:$0xff]  ;;  %v234_v27 = vld [vmem:[#allocation6 + $0x1a8] sm:$0xff] }
  0x5e   :  { %v236_v28 = vld [vmem:[#allocation6 + $0x1b8] sm:$0xff]  ;;  %v547_v29 = vpack.c.bf16 %v231_v26, %v229_v25  ;;  %v233_v31 = vld [vmem:[#allocation6 + $0x1a0] sm:$0xff]  ;;  %v235_v32 = vld [vmem:[#allocation6 + $0x1b0] sm:$0xff] }
  0x5f   :  { %v549_v30 = vpack.c.bf16 %v236_v28, %v234_v27  ;;  %v551_v33 = vpack.c.bf16 %v235_v32, %v233_v31  ;;  %v238_v34 = vld [vmem:[#allocation6 + $0x1c8] sm:$0xff]  ;;  %v240_v35 = vld [vmem:[#allocation6 + $0x1d8] sm:$0xff]  ;;  %v237_v37 = vld [vmem:[#allocation6 + $0x1c0] sm:$0xff] }
  0x60   :  { %516 = vmatpush1.bf16.msra.mxu1 %v515_v45  ;;  %v553_v36 = vpack.c.bf16 %v240_v35, %v238_v34  ;;  %v239_v38 = vld [vmem:[#allocation6 + $0x1d0] sm:$0xff]  ;;  %v242_v40 = vld [vmem:[#allocation6 + $0x1e8] sm:$0xff]  ;;  %v244_v41 = vld [vmem:[#allocation6 + $0x1f8] sm:$0xff] }
  0x61   :  { %518 = vmatprep.subr.bf16.mxu1 %v517_v46  ;;  %v555_v39 = vpack.c.bf16 %v239_v38, %v237_v37  ;;  %v557_v42 = vpack.c.bf16 %v244_v41, %v242_v40  ;;  %v241_v43 = vld [vmem:[#allocation6 + $0x1e0] sm:$0xff]  ;;  %v243_v44 = vld [vmem:[#allocation6 + $0x1f0] sm:$0xff]  ;;  %v351_v47 = vld [vmem:[#allocation7 + $0x88] sm:$0xff] }
  0x62   :  { %v559_v45 = vpack.c.bf16 %v243_v44, %v241_v43  ;;  %v350_v46 = vld [vmem:[#allocation7 + $0x80] sm:$0xff]  ;;  %v335_v50 = vld [vmem:[#allocation7 + $0x8] sm:$0xff]  ;;  %v336_v55 = vld [vmem:[#allocation7 + $0x10] sm:$0xff] }
  0x63   :  { %v334_v48 = vld [vmem:[#allocation7] sm:$0xff]  ;;  %v561_v49 = vpack.c.bf16 %v351_v47, %v350_v46  ;;  %v337_v56 = vld [vmem:[#allocation7 + $0x18] sm:$0xff]  ;;  %v339_v62 = vld [vmem:[#allocation7 + $0x28] sm:$0xff] }
  0x64   :  { %520 = vmatpush1.bf16.msra.mxu1 %v519_v51  ;;  %v352_v51 = vld [vmem:[#allocation7 + $0x90] sm:$0xff]  ;;  %v563_v53 = vpack.c.bf16 %v335_v50, %v334_v48  ;;  %v567_v59 = vpack.c.bf16 %v337_v56, %v336_v55  ;;  %v338_v61 = vld [vmem:[#allocation7 + $0x20] sm:$0xff]  ;;  %v341_v4 = vld [vmem:[#allocation7 + $0x38] sm:$0xff] }
  0x65   :  { %522 = vmatprep.subr.bf16.mxu1 %v521_v52  ;;  %v353_v52 = vld [vmem:[#allocation7 + $0x98] sm:$0xff]  ;;  %562 = vmatprep.subr.bf16.mxu0 %v561_v49  ;;  %v571_v1 = vpack.c.bf16 %v339_v62, %v338_v61  ;;  %v340_v3 = vld [vmem:[#allocation7 + $0x30] sm:$0xff]  ;;  %v342_v9 = vld [vmem:[#allocation7 + $0x40] sm:$0xff] }
  0x66   :  { %v565_v54 = vpack.c.bf16 %v353_v52, %v352_v51  ;;  %564 = vmatpush3.bf16.msra.mxu0 %v563_v53  ;;  %v575_v7 = vpack.c.bf16 %v341_v4, %v340_v3  ;;  %v343_v10 = vld [vmem:[#allocation7 + $0x48] sm:$0xff]  ;;  %v344_v15 = vld [vmem:[#allocation7 + $0x50] sm:$0xff]  ;;  %v345_v16 = vld [vmem:[#allocation7 + $0x58] sm:$0xff] }
  0x67   :  { %v579_v13 = vpack.c.bf16 %v343_v10, %v342_v9  ;;  %v88_v21 = vld [vmem:[%s813_s2] sm:$0x3]  ;;  %v363_v34 = vld [vmem:[#allocation7 + $0xe8] sm:$0xff] }
  0x68   :  { %524 = vmatpush1.bf16.msra.mxu1 %v523_v57  ;;  %v354_v57 = vld [vmem:[#allocation7 + $0xa0] sm:$0xff]  ;;  %566 = vmatprep.subr.bf16.mxu0 %v565_v54  ;;  %v347_v37 = vld [vmem:[#allocation7 + $0x68] sm:$0xff]  ;;  %v365_v40 = vld [vmem:[#allocation7 + $0xf8] sm:$0xff] }
  0x69   :  { %526 = vmatprep.subr.bf16.mxu1 %v525_v58  ;;  %v355_v58 = vld [vmem:[#allocation7 + $0xa8] sm:$0xff]  ;;  %v349_v43 = vld [vmem:[#allocation7 + $0x78] sm:$0xff] }
  0x6a   :  { %v569_v60 = vpack.c.bf16 %v355_v58, %v354_v57  ;;  %568 = vmatpush3.bf16.msra.mxu0 %v567_v59  ;;  %v453_v57 = vld [vmem:[%s817_s6] ss:$0 sm:$0xff] }
  0x6c   :  { %528 = vmatpush1.bf16.msra.mxu1 %v527_v63  ;;  %v356_v63 = vld [vmem:[#allocation7 + $0xb0] sm:$0xff]  ;;  %570 = vmatprep.subr.bf16.mxu0 %v569_v60 }
  0x6d   :  { %530 = vmatprep.subr.bf16.mxu1 %v529_v0  ;;  %v357_v0 = vld [vmem:[#allocation7 + $0xb8] sm:$0xff] }
  0x6e   :  { %v573_v2 = vpack.c.bf16 %v357_v0, %v356_v63  ;;  %572 = vmatpush3.bf16.msra.mxu0 %v571_v1 }
  0x70   :  { %532 = vmatpush1.bf16.msra.mxu1 %v531_v5  ;;  %v358_v5 = vld [vmem:[#allocation7 + $0xc0] sm:$0xff]  ;;  %574 = vmatprep.subr.bf16.mxu0 %v573_v2 }
  0x71   :  { %534 = vmatprep.subr.bf16.mxu1 %v533_v6  ;;  %v359_v6 = vld [vmem:[#allocation7 + $0xc8] sm:$0xff] }
  0x72   :  { %v577_v8 = vpack.c.bf16 %v359_v6, %v358_v5  ;;  %576 = vmatpush3.bf16.msra.mxu0 %v575_v7 }
  0x74   :  { %536 = vmatpush1.bf16.msra.mxu1 %v535_v11  ;;  %v360_v11 = vld [vmem:[#allocation7 + $0xd0] sm:$0xff]  ;;  %578 = vmatprep.subr.bf16.mxu0 %v577_v8 }
  0x75   :  { %538 = vmatprep.subr.bf16.mxu1 %v537_v12  ;;  %v361_v12 = vld [vmem:[#allocation7 + $0xd8] sm:$0xff] }
  0x76   :  { %v581_v14 = vpack.c.bf16 %v361_v12, %v360_v11  ;;  %580 = vmatpush3.bf16.msra.mxu0 %v579_v13 }
  0x78   :  { %540 = vmatpush1.bf16.msra.mxu1 %v539_v17  ;;  %v583_v17 = vpack.c.bf16 %v345_v16, %v344_v15  ;;  %582 = vmatprep.subr.bf16.mxu0 %v581_v14 }
  0x79   :  { %542 = vmatprep.subr.bf16.mxu1 %v541_v18  ;;  %v90_v18 = vlaneseq }
  0x7a   :  { %584 = vmatpush3.bf16.msra.mxu0 %v583_v17 }
  0x7b   :  { %v91_v19 = vshrl.u32 %v90_v18, 7 }
  0x7c   :  { %544 = vmatpush1.bf16.msra.mxu1 %v543_v23 }
  0x7d   :  { %546 = vmatprep.subr.bf16.mxu1 %v545_v24  ;;  %v92_v20 = vsub.s32 0, %v91_v19  ;;  %v96_v22 = vsub.s32 1, %v91_v19 }
  0x7f   :  { %v93_v23 = vrot.slane %v88_v21, %v92_v20  ;;  %v97_v24 = vrot.slane %v88_v21, %v96_v22 }
  0x80   :  { %548 = vmatpush1.bf16.msra.mxu1 %v547_v29 }
  0x81   :  { %550 = vmatprep.subr.bf16.mxu1 %v549_v30 }
  0x84   :  { %552 = vmatpush1.bf16.msra.mxu1 %v551_v33  ;;  %v362_v33 = vld [vmem:[#allocation7 + $0xe0] sm:$0xff] }
  0x85   :  { %554 = vmatprep.subr.bf16.mxu1 %v553_v36  ;;  %v585_v35 = vpack.c.bf16 %v363_v34, %v362_v33  ;;  %v346_v36 = vld [vmem:[#allocation7 + $0x60] sm:$0xff] }
  0x86   :  { %v587_v38 = vpack.c.bf16 %v347_v37, %v346_v36 }
  0x87   :  { %586 = vmatprep.subr.bf16.mxu0 %v585_v35 }
  0x88   :  { %556 = vmatpush1.bf16.msra.mxu1 %v555_v39  ;;  %588 = vmatpush3.bf16.msra.mxu0 %v587_v38  ;;  %v364_v39 = vld [vmem:[#allocation7 + $0xf0] sm:$0xff] }
  0x89   :  { %558 = vmatprep.subr.bf16.mxu1 %v557_v42  ;;  %v589_v41 = vpack.c.bf16 %v365_v40, %v364_v39  ;;  %v348_v42 = vld [vmem:[#allocation7 + $0x70] sm:$0xff] }
  0x8a   :  { %v591_v44 = vpack.c.bf16 %v349_v43, %v348_v42 }
  0x8b   :  { %590 = vmatprep.subr.bf16.mxu0 %v589_v41 }
  0x8c   :  { %560 = vmatpush1.bf16.msra.mxu1 %v559_v45  ;;  %592 = vmatpush3.bf16.msra.mxu0 %v591_v44  ;;  %v245_v45 = vld [vmem:[%s815_s4] sm:$0x3] }
  0x8d   :  { %v250_v46 = vrot.slane %v245_v45, %v92_v20  ;;  %v254_v47 = vrot.slane %v245_v45, %v96_v22 }
 0x127   :  { %v170_v25 = vpop.f32.mrb[0].mxu0 }
 0x128   :  { %v171_v26 = vadd.f32 %v170_v25, %v93_v23  ;;  %v172_v27 = vpop.f32.mrb[1].mxu0 }
 0x129   :  { %v173_v28 = vadd.f32 %v172_v27, %v97_v24 }
 0x12a   :  { %v177_v29 = vmul.f32 0.2, %v171_v26  ;;  %vm175_vm2 = vcmp.gt.f32.partialorder %v171_v26, 0.0 }
 0x12b   :  { %vm176_vm1 = vcmp.gt.f32.partialorder %v173_v28, 0.0  ;;  %v178_v30 = vmul.f32 0.2, %v173_v28 }
 0x12c   :  { %v179_v32 = vsel %vm175_vm2, %v171_v26, %v177_v29 }
 0x12d   :  { %v180_v31 = vsel %vm176_vm1, %v173_v28, %v178_v30 }
 0x12e   :  { %321 = vmatprep.mubr.f32.mxu1 %v180_v31 }
 0x12f   :  { %322 = vmatmul.mubr.f32.vlgmr.msra.gmra.mrb[0].mxu1 %v179_v32 }
 0x202   :  { %v323_v48 = vpop.f32.mrb[0].mxu1 }
 0x203   :  { %v324_v49 = vadd.f32 %v323_v48, %v250_v46  ;;  %v325_v50 = vpop.f32.mrb[1].mxu1 }
 0x204   :  { %v326_v51 = vadd.f32 %v325_v50, %v254_v47 }
 0x205   :  { %v330_v52 = vmul.f32 0.2, %v324_v49  ;;  %vm328_vm3 = vcmp.gt.f32.partialorder %v324_v49, 0.0 }
 0x206   :  { %v331_v53 = vmul.f32 0.2, %v326_v51  ;;  %vm329_vm4 = vcmp.gt.f32.partialorder %v326_v51, 0.0 }
 0x207   :  { %v332_v55 = vsel %vm328_vm3, %v324_v49, %v330_v52 }
 0x208   :  { %v333_v54 = vsel %vm329_vm4, %v326_v51, %v331_v53 }
 0x209   :  { %437 = vmatprep.mubr.f32.mxu0 %v333_v54 }
 0x20a   :  { %438 = vmatmul.mubr.f32.vlgmr.msra.gmra.mrb[2].mxu0 %v332_v55 }
 0x2dd   :  { %v486_v56 = vpop.f32.mrb[2].mxu0 }
 0x2de   :  { %v487_v58 = vpop.f32.mrb[3].mxu0 }
 0x2df   :  { %v488_v59 = vadd.f32 %v487_v58, %v486_v56 }
 0x2e1   :  { %v440_v60 = vadd.f32 %v488_v59, %v453_v57 }
 0x2e3   :  { %444 = vst.msk [vmem:[%s818_s7] sm:$0xff] %vm443_vm5, %v440_v60 }
 0x2e4   :  { %449 = vsyncpa [#allocation3], 1 }
 0x2e5   :  { %450 = vsyncpa [#allocation5], 1 }
 0x2e6   :  { %451 = vsyncpa [#allocation8], 1 }

</bundles_post_ra>
